<compile_context>
chip_gen: v5e
topology: v5e:2x2
jax: 0.10.0
libtpu: 0.0.40
codegen_flags: <defaults>
</compile_context>

<pallas_src>
import math

import jax
import jax.numpy as jnp
from jax.experimental import pallas as pl
from jax.experimental.pallas import tpu as pltpu


def _round_up(x: int, m: int) -> int:
    return ((x + m - 1) // m) * m


# ----------------------------- kernels --------------------------------------

def _linear_fused_kernel(x_ref, w_ref, b_ref, o_ref):
    # x_ref: (tm, kp)  w_ref: (kp, tn)  b_ref: (1, tn) f32  o_ref: (tm, tn)
    acc = jnp.dot(x_ref[...], w_ref[...], preferred_element_type=jnp.float32)
    o_ref[...] = (acc + b_ref[...]).astype(o_ref.dtype)


def _linear_acc_kernel(x_ref, w_ref, b_ref, o_ref, acc_ref):
    # x_ref: (tm, tk)  w_ref: (tk, tn)  b_ref: (1, tn)  o_ref/acc_ref: (tm, tn)
    k = pl.program_id(2)

    @pl.when(k == 0)
    def _():
        acc_ref[...] = jnp.zeros_like(acc_ref)

    acc_ref[...] += jnp.dot(x_ref[...], w_ref[...],
                            preferred_element_type=jnp.float32)

    @pl.when(k == pl.num_programs(2) - 1)
    def _():
        o_ref[...] = (acc_ref[...] + b_ref[...]).astype(o_ref.dtype)


# --------------------------- parameter prep ---------------------------------

def prepare_linear_params(weight, bias=None, *, compute_dtype=jnp.bfloat16,
                          max_fused_k=4096, tk=2048):
    """One-time (init / checkpoint-load) weight & bias preparation.

    weight: (d_out, d_in) in PyTorch layout.  Returns:
      w_prepped: (kp, d_out) — transposed so the kernel contracts the RHS
                 sublane axis (MXU-native), cast to compute_dtype, K zero-padded.
      b_prepped: (1, d_out) float32 (zeros if bias is None).
    """
    d_out, d_in = weight.shape
    w = jnp.asarray(weight)
    if compute_dtype is not None:
        w = w.astype(compute_dtype)
    w = w.T  # (d_in, d_out)

    if d_in <= max_fused_k:
        kp = _round_up(d_in, 128)          # fused-K path
    else:
        kp = _round_up(d_in, tk)           # accumulator path: K tiles of tk
    if kp != d_in:
        w = jnp.pad(w, ((0, kp - d_in), (0, 0)))   # zeros: safe for reduction

    if bias is None:
        b = jnp.zeros((1, d_out), jnp.float32)
    else:
        b = jnp.asarray(bias, jnp.float32).reshape(1, d_out)
    return w, b


# ------------------------------ forward -------------------------------------

def pallas_linear(x, w_prepped, b_prepped, *, tm=256, tn=512, tk=2048,
                  max_fused_k=4096, vmem_limit_bytes=None):
    """y = x @ W.T + b, with (w_prepped, b_prepped) from prepare_linear_params."""
    kp, d_out = w_prepped.shape
    lead = x.shape[:-1]
    d_in = x.shape[-1]
    m = int(math.prod(lead)) if lead else 1
    out_dtype = x.dtype

    x2d = x.reshape(m, d_in)
    if x2d.dtype != w_prepped.dtype:
        x2d = x2d.astype(w_prepped.dtype)          # bf16 compute path by default
    if d_in != kp:
        # Zero-pad only the contraction dim (required for correctness).
        # M and N stay unpadded; Pallas masks the ragged boundary blocks.
        x2d = jnp.pad(x2d, ((0, 0), (0, kp - d_in)))

    # Tile selection: full-dim blocks are always legal; otherwise keep
    # (8, 128) alignment so boundary blocks are the only masked ones.
    tm = min(tm, m)
    if tm < m:
        tm = max(8, (tm // 8) * 8)
    tn = min(tn, d_out)
    if tn < d_out:
        tn = max(128, (tn // 128) * 128)

    grid_m = pl.cdiv(m, tm)
    grid_n = pl.cdiv(d_out, tn)

    x_bytes = x2d.size * x2d.dtype.itemsize
    w_bytes = w_prepped.size * w_prepped.dtype.itemsize
    b_bytes = b_prepped.size * b_prepped.dtype.itemsize
    out_bytes = m * d_out * jnp.dtype(out_dtype).itemsize

    extra = {}
    if vmem_limit_bytes is not None:
        extra["vmem_limit_bytes"] = vmem_limit_bytes

    if kp <= max_fused_k:
        # Fused-K path: single MXU pass per (i, j) tile, no accumulator scratch.
        # x block index (i, 0) is constant over the N sweep -> x stays resident.
        out = pl.pallas_call(
            _linear_fused_kernel,
            out_shape=jax.ShapeDtypeStruct((m, d_out), out_dtype),
            grid_spec=pltpu.PrefetchScalarGridSpec(
                num_scalar_prefetch=0,
                grid=(grid_m, grid_n),
                in_specs=[
                    pl.BlockSpec((tm, kp), lambda i, j: (i, 0)),   # activations
                    pl.BlockSpec((kp, tn), lambda i, j: (0, j)),   # weight (K, N)
                    pl.BlockSpec((1, tn), lambda i, j: (0, j)),    # bias
                ],
                out_specs=pl.BlockSpec((tm, tn), lambda i, j: (i, j)),
            ),
            compiler_params=pltpu.CompilerParams(
                dimension_semantics=("parallel", "parallel"), **extra),
            cost_estimate=pl.CostEstimate(
                flops=2 * m * d_out * kp,
                transcendentals=0,
                bytes_accessed=int(x_bytes + grid_m * (w_bytes + b_bytes)
                                   + out_bytes),
            ),
        )(x2d, w_prepped, b_prepped)
    else:
        # Accumulator path for very large K (P3 pattern, K-last grid).
        if kp % tk:
            tk = math.gcd(kp, tk)   # both multiples of 128 -> stays aligned
        out = pl.pallas_call(
            _linear_acc_kernel,
            out_shape=jax.ShapeDtypeStruct((m, d_out), out_dtype),
            grid_spec=pltpu.PrefetchScalarGridSpec(
                num_scalar_prefetch=0,
                grid=(grid_m, grid_n, kp // tk),
                in_specs=[
                    pl.BlockSpec((tm, tk), lambda i, j, k: (i, k)),
                    pl.BlockSpec((tk, tn), lambda i, j, k: (k, j)),
                    pl.BlockSpec((1, tn), lambda i, j, k: (0, j)),
                ],
                out_specs=pl.BlockSpec((tm, tn), lambda i, j, k: (i, j)),
                scratch_shapes=[pltpu.VMEM((tm, tn), jnp.float32)],
            ),
            compiler_params=pltpu.CompilerParams(
                dimension_semantics=("parallel", "parallel", "arbitrary"),
                **extra),
            cost_estimate=pl.CostEstimate(
                flops=2 * m * d_out * kp,
                transcendentals=0,
                bytes_accessed=int(grid_n * x_bytes
                                   + grid_m * (w_bytes + b_bytes) + out_bytes),
            ),
        )(x2d, w_prepped, b_prepped)

    return out.reshape(*lead, d_out)


def init_linear_params(key, d_in, d_out):
    """Xavier normal weight (matches init.xavier_normal_), zero bias."""
    std = math.sqrt(2.0 / (d_in + d_out))
    w = std * jax.random.normal(key, (d_out, d_in), dtype=jnp.float32)
    b = jnp.zeros((d_out,), dtype=jnp.float32)
    return w, b


if __name__ == "__main__":
    key = jax.random.PRNGKey(0)
    k_x, k_w, k2_x, k2_w, k3_x, k3_w = jax.random.split(key, 6)

    # Case 1: small shape (batch=2, seq=8, d_in=32, d_out=32).
    batch, seq, d_in, d_out = 2, 8, 32, 32
    x = jax.random.normal(k_x, (batch, seq, d_in), dtype=jnp.float32)
    w, b = init_linear_params(k_w, d_in, d_out)
    y_ref = x @ w.T + b

    wp, bp = prepare_linear_params(w, b)                  # bf16 compute (default)
    y = jax.block_until_ready(pallas_linear(x, wp, bp))
    assert y.shape == (batch, seq, d_out)
    assert jnp.allclose(y, y_ref, atol=5e-2, rtol=5e-2)

    wp32, bp32 = prepare_linear_params(w, b, compute_dtype=None)   # exact f32 path
    y32 = jax.block_until_ready(pallas_linear(x, wp32, bp32))
    assert jnp.allclose(y32, y_ref, atol=1e-5, rtol=1e-5)

    # Case 2: non-128-aligned d_in, ragged M tiles, fused-K path.
    x2 = jax.random.normal(k2_x, (4, 96, 300), dtype=jnp.float32)
    w2, b2 = init_linear_params(k2_w, 300, 384)
    w2p, b2p = prepare_linear_params(w2, b2)
    y2 = jax.block_until_ready(pallas_linear(x2, w2p, b2p, tm=256, tn=384))
    assert jnp.allclose(y2, x2 @ w2.T + b2, atol=5e-2, rtol=5e-2)

    # Case 3: force the multi-K accumulator path (small max_fused_k).
    x3 = jax.random.normal(k3_x, (2, 64, 512), dtype=jnp.float32)
    w3, b3 = init_linear_params(k3_w, 512, 256)
    w3p, b3p = prepare_linear_params(w3, b3, max_fused_k=128, tk=256)
    y3 = jax.block_until_ready(
        pallas_linear(x3, w3p, b3p, tm=128, tn=256, tk=256, max_fused_k=128))
    assert jnp.allclose(y3, x3 @ w3.T + b3, atol=5e-2, rtol=5e-2)

    print("KERNEL_OK")
</pallas_src>

<mosaic_0001>
module attributes {stable_mosaic.version = 11 : i64} {
  func.func @_linear_fused_kernel(%arg0: i32, %arg1: i32, %arg2: memref<16x128xbf16, #tpu.memory_space<vmem>>, %arg3: memref<128x32xbf16, #tpu.memory_space<vmem>>, %arg4: memref<1x32xf32, #tpu.memory_space<vmem>>, %arg5: memref<16x32xf32, #tpu.memory_space<vmem>>) attributes {dimension_semantics = [#tpu.dimension_semantics<parallel>, #tpu.dimension_semantics<parallel>], iteration_bounds = array<i64: 1, 1>, scalar_prefetch = 0 : i64, scratch_operands = 0 : i64, tpu.core_type = #tpu.core_type<tc>, window_params = [{transform_indices = @transform_0, window_bounds = array<i64: 16, 128>}, {transform_indices = @transform_1, window_bounds = array<i64: 128, 32>}, {transform_indices = @transform_2, window_bounds = array<i64: 1, 32>}, {transform_indices = @transform_3, window_bounds = array<i64: 16, 32>}]} {
    %c0 = arith.constant 0 : index
    %c0_0 = arith.constant 0 : index
    %0 = vector.load %arg2[%c0, %c0_0] : memref<16x128xbf16, #tpu.memory_space<vmem>>, vector<16x128xbf16>
    %c0_1 = arith.constant 0 : index
    %c0_2 = arith.constant 0 : index
    %1 = vector.load %arg3[%c0_1, %c0_2] : memref<128x32xbf16, #tpu.memory_space<vmem>>, vector<128x32xbf16>
    %cst = arith.constant dense<0.000000e+00> : vector<16x32xf32>
    %2 = tpu.matmul %0, %1, %cst {dimension_numbers = #tpu.dot_dimension_numbers<[1], [0], [0], [1], [0, 0, 1, 1], [], []>} : vector<16x128xbf16>, vector<128x32xbf16>, vector<16x32xf32> -> vector<16x32xf32>
    %c0_3 = arith.constant 0 : index
    %c0_4 = arith.constant 0 : index
    %3 = vector.load %arg4[%c0_3, %c0_4] : memref<1x32xf32, #tpu.memory_space<vmem>>, vector<1x32xf32>
    %4 = vector.broadcast %3 : vector<1x32xf32> to vector<16x32xf32>
    %5 = arith.addf %2, %4 : vector<16x32xf32>
    %c0_5 = arith.constant 0 : index
    %c0_6 = arith.constant 0 : index
    %6 = vector.load %arg5[%c0_5, %c0_6] : memref<16x32xf32, #tpu.memory_space<vmem>>, vector<16x32xf32>
    tpu.vector_store %arg5[%c0_5, %c0_6], %5 {strides = array<i32>} : memref<16x32xf32, #tpu.memory_space<vmem>>, vector<16x32xf32>,
    return
  }
  func.func @transform_0(%arg0: i32, %arg1: i32) -> (i32, i32) {
    %c0_i32 = arith.constant 0 : i32
    %c0_i32_0 = arith.constant 0 : i32
    return %arg0, %c0_i32 : i32, i32
  }
  func.func @transform_1(%arg0: i32, %arg1: i32) -> (i32, i32) {
    %c0_i32 = arith.constant 0 : i32
    %c0_i32_0 = arith.constant 0 : i32
    return %c0_i32, %arg1 : i32, i32
  }
  func.func @transform_2(%arg0: i32, %arg1: i32) -> (i32, i32) {
    %c0_i32 = arith.constant 0 : i32
    %c0_i32_0 = arith.constant 0 : i32
    return %c0_i32, %arg1 : i32, i32
  }
  func.func @transform_3(%arg0: i32, %arg1: i32) -> (i32, i32) {
    %c0_i32 = arith.constant 0 : i32
    return %arg0, %arg1 : i32, i32
  }
}

</mosaic_0001>

<bundles_post_ra>
// kernel: tpu_custom_call.1
= control target key start
LH: loop header
LB: loop body
LE: loop exit
PB: predicated region body
PF: predicated region fallthrough
CT: control target
= control target key end

     0   :  { %s257_s0 = inlined_call_operand.vmem [shape: bf16[16,128], index: 0, kind: input, shape index: {}]   ;;  %s258_s1 = inlined_call_operand.vmem [shape: bf16[128,32], index: 1, kind: input, shape index: {}]   ;;  %s259_s2 = inlined_call_operand.vmem [shape: f32[1,32], index: 2, kind: input, shape index: {}]   ;;  %s260_s3 = inlined_call_operand.hbm [shape: f32[16,32], index: 3, kind: output, shape index: {}]  }
   0x1   :  { %v170_v0 = vld [vmem:[%s258_s1 + $0x38] sm:$0xff]  ;;  %v169_v1 = vld [vmem:[%s258_s1 + $0x30] sm:$0xff] }
   0x2   :  { %91 = vmatpush.bf16.msra.mxu0 %v170_v0 }
   0x3   :  { %8 = vsyncpa [#allocation3], 0  ;;  %v168_v2 = vld [vmem:[%s258_s1 + $0x28] sm:$0xff]  ;;  %v167_v3 = vld [vmem:[%s258_s1 + $0x20] sm:$0xff]  ;;  %vm105_vm0 = vcmask 261120   ;;  %s201_s5 = smov [#allocation2]  }
   0x4   :  { %v166_v4 = vld [vmem:[%s258_s1 + $0x18] sm:$0xff]  ;;  %v165_v5 = vld [vmem:[%s258_s1 + $0x10] sm:$0xff]  ;;  %v164_v6 = vld [vmem:[%s258_s1 + $0x8] sm:$0xff]  ;;  %s112_s6 = sshll.u32 %s201_s5, 4  ;;  %s203_s9 = smov 8   ;;  %s113_s6 = int_to_ptr.vmem [resolvable:$true] %s112_s6 }
   0x5   :  { %v163_v7 = vld [vmem:[%s258_s1] sm:$0xff]  ;;  %s114_s1 = sshll.u32 %s260_s3, 4  ;;  %s115_s1 = int_to_ptr.hbm [resolvable:$true] %s114_s1 }
   0x6   :  { %92 = vmatpush.bf16.msra.mxu0 %v169_v1  ;;  %v162_v8 = vld [vmem:[%s257_s0] sm:$0xff]  ;;  %s202_s0 = smov 128  }
   0x7   :  { %v174_v9 = vld [vmem:[%s259_s2] ss:$0 sm:$0xff] }
   0xa   :  { %93 = vmatpush.bf16.msra.mxu0 %v168_v2 }
   0xe   :  { %94 = vmatpush.bf16.msra.mxu0 %v167_v3 }
  0x12   :  { %95 = vmatpush.bf16.msra.mxu0 %v166_v4 }
  0x16   :  { %96 = vmatpush.bf16.msra.mxu0 %v165_v5 }
  0x1a   :  { %97 = vmatpush.bf16.msra.mxu0 %v164_v6 }
  0x1e   :  { %98 = vmatpush.bf16.msra.mxu0 %v163_v7 }
  0x21   :  { %99 = vmatmul.bf16.vlgmr.msra.gmra.mxu0 %v162_v8 }
  0x9e   :  { %v100_v10 = vpop.f32.mrf.mxu0 }
  0x9f   :  { %v101_v11 = vadd.f32 %v174_v9, %v100_v10 }
  0xa1   :  { %106 = vst.msk [vmem:[#allocation2] sm:$0xff] %vm105_vm0, %v101_v11 }
  0xa6   :  { %v102_v12 = vpop.f32.mrf.mxu0 }
  0xa7   :  { %v103_v13 = vadd.f32 %v174_v9, %v102_v12 }
  0xa9   :  { %107 = vst.msk [vmem:[#allocation2 + $0x8] sm:$0xff] %vm105_vm0, %v103_v13 }
  0xaa   :  { %120 = dma.vmem_to_hbm [thread:$0]  %s113_s6, 256, %s115_s1, [#allocation3], %s202_s0, %s202_s0, %s203_s9  }
  0xab   :  { %199 = dma.done.wait [#allocation3], 256  }
  0xac   :  { %200 = vsyncadd [#allocation3], 4294967040 }
  0xad   :  { %125 = vsyncpa [#allocation3], 1 }

</bundles_post_ra>
